<compile_context>
chip_gen: v7x
topology: tpu7x:2x2x1
jax: 0.10.0
libtpu: 0.0.40
codegen_flags: <defaults>
</compile_context>

<pallas_src>
import functools

import jax
import jax.numpy as jnp
from jax.experimental import pallas as pl
from jax.experimental.pallas import tpu as pltpu


def _se_kernel(x_ref, w1t_ref, w2t_ref, o_ref, *, pool_mode):
    # x_ref / o_ref: (Bt, HW, C) channels-last; w1t_ref: (C, Cr); w2t_ref: (Cr, C)
    x = x_ref[...]                                   # native dtype, C on lane axis
    hw = x_ref.shape[1]

    # Squeeze: global pool over spatial positions, accumulating in float32.
    if pool_mode == "avg":
        pooled = jnp.sum(x, axis=1, dtype=jnp.float32) * (1.0 / hw)       # (Bt, C)
    else:  # 'max'
        pooled = jnp.max(x, axis=1).astype(jnp.float32)                   # (Bt, C)

    # Excitation: Linear -> ReLU -> Linear -> Sigmoid (weights pre-transposed,
    # so both dots contract directly with no in-kernel transpose).
    h = jnp.dot(pooled, w1t_ref[...].astype(jnp.float32),
                preferred_element_type=jnp.float32)                       # (Bt, Cr)
    h = jnp.maximum(h, 0.0)
    s = jnp.dot(h, w2t_ref[...].astype(jnp.float32),
                preferred_element_type=jnp.float32)                       # (Bt, C)
    s = jax.nn.sigmoid(s)

    # Scale: per-channel gate broadcast over HW; cast the gate, keep x native.
    o_ref[...] = (x * s.astype(x.dtype)[:, None, :]).astype(o_ref.dtype)


def _pick_bt(batch, bytes_per_elem, max_block_bytes=8 << 20):
    """Largest Bt dividing B whose block fits ~8 MiB and keeps >= 2 grid steps."""
    bt = 1
    for cand in range(1, batch + 1):
        if batch % cand:
            continue
        if cand * bytes_per_elem > max_block_bytes:
            continue
        if batch >= 2 and batch // cand < 2:
            continue  # keep grid length >= 2 (v7x has 2 TCs; also lets DMA overlap)
        bt = cand
    return bt


def se_layer(x, w1, w2, *, pool_mode="avg"):
    """x: (B, C, H, W) NCHW (PyTorch layout). w1: (C//r, C), w2: (C, C//r)."""
    B, C, H, W = x.shape
    Cr = w1.shape[0]
    HW = H * W
    itemsize = jnp.dtype(x.dtype).itemsize

    # Channels-last so C is lane-dense inside the kernel (layout plumbing only).
    x_cl = jnp.transpose(x, (0, 2, 3, 1)).reshape(B, HW, C)

    # Pre-transpose the Linear weights once (torch Linear computes y @ W.T).
    w1_t = w1.T                                     # (C, Cr)
    w2_t = w2.T                                     # (Cr, C)
    w_item = jnp.dtype(w1.dtype).itemsize

    Bt = _pick_bt(B, HW * C * itemsize)
    grid = (B // Bt,)

    # VMEM budget: double-buffered in + out blocks + both weights + headroom,
    # clamped so it never exceeds v7x's smaller 64 MiB physical VMEM.
    block_bytes = Bt * HW * C * itemsize
    w_bytes = 2 * C * Cr * w_item
    vmem_limit = min(max(4 * block_bytes + 2 * w_bytes + (4 << 20), 16 << 20), 48 << 20)

    # HBM-bandwidth-bound: one read + one write of x dominates.
    cost = pl.CostEstimate(
        flops=4 * B * C * Cr + B * C * HW,
        transcendentals=B * C,
        bytes_accessed=2 * B * C * HW * itemsize + w_bytes,
    )

    out_cl = pl.pallas_call(
        functools.partial(_se_kernel, pool_mode=pool_mode),
        out_shape=jax.ShapeDtypeStruct((B, HW, C), x.dtype),
        grid_spec=pltpu.PrefetchScalarGridSpec(
            num_scalar_prefetch=0,
            grid=grid,
            in_specs=[
                pl.BlockSpec((Bt, HW, C), lambda b: (b, 0, 0)),
                pl.BlockSpec((C, Cr), lambda b: (0, 0)),
                pl.BlockSpec((Cr, C), lambda b: (0, 0)),
            ],
            out_specs=pl.BlockSpec((Bt, HW, C), lambda b: (b, 0, 0)),
        ),
        compiler_params=pltpu.CompilerParams(
            dimension_semantics=("parallel",),
            vmem_limit_bytes=vmem_limit,
        ),
        cost_estimate=cost,
    )(x_cl, w1_t, w2_t)

    return jnp.transpose(out_cl.reshape(B, H, W, C), (0, 3, 1, 2))


def se_layer_ref(x, w1, w2, *, pool_mode="avg"):
    """Pure-JAX reference matching the PyTorch module."""
    if pool_mode == "avg":
        y = jnp.mean(x, axis=(2, 3))                # (B, C)
    else:
        y = jnp.max(x, axis=(2, 3))                 # (B, C)
    y = jnp.maximum(y @ w1.T, 0.0)                  # (B, C//r)
    y = jax.nn.sigmoid(y @ w2.T)                    # (B, C)
    return x * y[:, :, None, None]


if __name__ == "__main__":
    # Shapes consistent with SELayer(channel=128, reduction=16)
    B, C, H, W = 2, 128, 8, 8
    reduction = 16
    Cr = C // reduction

    key = jax.random.PRNGKey(0)
    kx, k1, k2 = jax.random.split(key, 3)

    x = jax.random.normal(kx, (B, C, H, W), dtype=jnp.float32)
    # Deterministic "Kaiming-ish" init for the two bias-free Linear layers.
    w1 = jax.random.normal(k1, (Cr, C), dtype=jnp.float32) * (1.0 / (C ** 0.5))
    w2 = jax.random.normal(k2, (C, Cr), dtype=jnp.float32) * (1.0 / (Cr ** 0.5))

    out = jax.block_until_ready(se_layer(x, w1, w2))
    ref = jax.block_until_ready(se_layer_ref(x, w1, w2))
    assert out.shape == (B, C, H, W)
    assert jnp.allclose(out, ref, atol=1e-5, rtol=1e-5), "avg-pool mismatch vs reference"

    out_max = jax.block_until_ready(se_layer(x, w1, w2, pool_mode="max"))
    ref_max = jax.block_until_ready(se_layer_ref(x, w1, w2, pool_mode="max"))
    assert jnp.allclose(out_max, ref_max, atol=1e-5, rtol=1e-5), "max-pool mismatch vs reference"

    print("KERNEL_OK")
</pallas_src>

<mosaic_0001>
module attributes {stable_mosaic.version = 11 : i64} {
  func.func @_se_kernel(%arg0: i32, %arg1: memref<1x64x128xf32, #tpu.memory_space<vmem>>, %arg2: memref<128x8xf32, #tpu.memory_space<vmem>>, %arg3: memref<8x128xf32, #tpu.memory_space<vmem>>, %arg4: memref<1x64x128xf32, #tpu.memory_space<vmem>>) attributes {dimension_semantics = [#tpu.dimension_semantics<parallel>], iteration_bounds = array<i64: 2>, scalar_prefetch = 0 : i64, scratch_operands = 0 : i64, tpu.core_type = #tpu.core_type<tc>, window_params = [{transform_indices = @transform_0, window_bounds = array<i64: 1, 64, 128>}, {pipeline_mode = #tpu.pipeline_mode<synchronous>, transform_indices = @transform_1, window_bounds = array<i64: 128, 8>}, {pipeline_mode = #tpu.pipeline_mode<synchronous>, transform_indices = @transform_2, window_bounds = array<i64: 8, 128>}, {transform_indices = @transform_3, window_bounds = array<i64: 1, 64, 128>}]} {
    %c0 = arith.constant 0 : index
    %c0_0 = arith.constant 0 : index
    %c0_1 = arith.constant 0 : index
    %0 = vector.load %arg1[%c0, %c0_0, %c0_1] : memref<1x64x128xf32, #tpu.memory_space<vmem>>, vector<1x64x128xf32>
    %cst = arith.constant dense<0.000000e+00> : vector<1x128xf32>
    %1 = vector.multi_reduction <add>, %0, %cst [1] : vector<1x64x128xf32> to vector<1x128xf32>
    %cst_2 = arith.constant 1.562500e-02 : f32
    %2 = vector.broadcast %cst_2 : f32 to vector<1x128xf32>
    %3 = arith.mulf %1, %2 : vector<1x128xf32>
    %c0_3 = arith.constant 0 : index
    %c0_4 = arith.constant 0 : index
    %4 = vector.load %arg2[%c0_3, %c0_4] : memref<128x8xf32, #tpu.memory_space<vmem>>, vector<128x8xf32>
    %cst_5 = arith.constant dense<0.000000e+00> : vector<1x8xf32>
    %5 = tpu.matmul %3, %4, %cst_5 {dimension_numbers = #tpu.dot_dimension_numbers<[1], [0], [0], [1], [0, 0, 1, 1], [], []>} : vector<1x128xf32>, vector<128x8xf32>, vector<1x8xf32> -> vector<1x8xf32>
    %cst_6 = arith.constant 0.000000e+00 : f32
    %6 = vector.broadcast %cst_6 : f32 to vector<1x8xf32>
    %7 = arith.maximumf %5, %6 : vector<1x8xf32>
    %c0_7 = arith.constant 0 : index
    %c0_8 = arith.constant 0 : index
    %8 = vector.load %arg3[%c0_7, %c0_8] : memref<8x128xf32, #tpu.memory_space<vmem>>, vector<8x128xf32>
    %cst_9 = arith.constant dense<0.000000e+00> : vector<1x128xf32>
    %9 = tpu.matmul %7, %8, %cst_9 {dimension_numbers = #tpu.dot_dimension_numbers<[1], [0], [0], [1], [0, 0, 1, 1], [], []>} : vector<1x8xf32>, vector<8x128xf32>, vector<1x128xf32> -> vector<1x128xf32>
    %10 = arith.negf %9 : vector<1x128xf32>
    %11 = math.exp %10 : vector<1x128xf32>
    %cst_10 = arith.constant 1.000000e+00 : f32
    %12 = vector.broadcast %cst_10 : f32 to vector<1x128xf32>
    %13 = arith.addf %12, %11 : vector<1x128xf32>
    %14 = arith.divf %12, %13 : vector<1x128xf32>
    %15 = vector.shape_cast %14 : vector<1x128xf32> to vector<1x1x128xf32>
    %16 = vector.broadcast %15 : vector<1x1x128xf32> to vector<1x64x128xf32>
    %17 = arith.mulf %0, %16 : vector<1x64x128xf32>
    %c0_11 = arith.constant 0 : index
    %c0_12 = arith.constant 0 : index
    %c0_13 = arith.constant 0 : index
    %18 = vector.load %arg4[%c0_11, %c0_12, %c0_13] : memref<1x64x128xf32, #tpu.memory_space<vmem>>, vector<1x64x128xf32>
    tpu.vector_store %arg4[%c0_11, %c0_12, %c0_13], %17 {strides = array<i32>} : memref<1x64x128xf32, #tpu.memory_space<vmem>>, vector<1x64x128xf32>,
    return
  }
  func.func @transform_0(%arg0: i32) -> (i32, i32, i32) {
    %c0_i32 = arith.constant 0 : i32
    %c0_i32_0 = arith.constant 0 : i32
    %c0_i32_1 = arith.constant 0 : i32
    return %arg0, %c0_i32, %c0_i32_0 : i32, i32, i32
  }
  func.func @transform_1(%arg0: i32) -> (i32, i32) {
    %c0_i32 = arith.constant 0 : i32
    %c0_i32_0 = arith.constant 0 : i32
    %c0_i32_1 = arith.constant 0 : i32
    return %c0_i32, %c0_i32_0 : i32, i32
  }
  func.func @transform_2(%arg0: i32) -> (i32, i32) {
    %c0_i32 = arith.constant 0 : i32
    %c0_i32_0 = arith.constant 0 : i32
    %c0_i32_1 = arith.constant 0 : i32
    return %c0_i32, %c0_i32_0 : i32, i32
  }
  func.func @transform_3(%arg0: i32) -> (i32, i32, i32) {
    %c0_i32 = arith.constant 0 : i32
    %c0_i32_0 = arith.constant 0 : i32
    %c0_i32_1 = arith.constant 0 : i32
    return %arg0, %c0_i32, %c0_i32_0 : i32, i32, i32
  }
}

</mosaic_0001>

<bundles_post_ra>
// kernel: tpu_custom_call.1
= control target key start
LH: loop header
LB: loop body
LE: loop exit
PB: predicated region body
PF: predicated region fallthrough
CT: control target
= control target key end

     0   :  { %8 = vsyncpa [#allocation3], 0  ;;  %s878_s0 = inlined_call_operand.vmem [shape: f32[2,64,128], index: 0, kind: input, shape index: {}]   ;;  %s879_s1 = inlined_call_operand.vmem [shape: f32[128,8], index: 1, kind: input, shape index: {}]   ;;  %s880_s2 = inlined_call_operand.vmem [shape: f32[8,128], index: 2, kind: input, shape index: {}]   ;;  %s881_s3 = inlined_call_operand.hbm [shape: f32[2,64,128], index: 3, kind: output, shape index: {}]  }
   0x1   :  { %10 = vsyncpa [#allocation3 + $0x1], 0  ;;  %s692_s12 = smov 0   ;;  %s694_s13 = smov 0  }
   0x2   :  { %s696_s14 = smov 0   ;;  %s698_s15 = smov 0  }
   0x3 LB: > { %s713_s16 = sadd.s32 4294967295, %s664_s15   ;;  %s455_s17 = sadd.s32 4294967294, %s664_s15   ;;  %s664_s15 = sphi %s698_s15, %s887_s15   ;;  %s660_s14 = sphi %s696_s14, %s886_s14   ;;  %s656_s13 = sphi %s694_s13, %s885_s13   ;;  %s652_s12 = sphi %s692_s12, %s884_s12  }
   0x4   : > { %s717_s18 = sadd.s32 1, %s664_s15   ;;  %s91_s19 = sadd.s32 1, %s660_s14 }
   0x5   : > { %s88_s20 = ssub.s32 %s664_s15, %s717_s18  ;;  %p101_p0 = scmp.ne.s32.totalorder %s660_s14, %s656_s13 }
   0x6   : > { %p89_p1 = scmp.eq.s32.totalorder %s88_s20, 0  ;;  %p102_p2 = scmp.eq.s32.totalorder %s713_s16, 1 }
   0x7   : > { %p107_p3 = scmp.ne.s32.totalorder %s656_s13, %s652_s12  ;;  %p108_p4 = scmp.eq.s32.totalorder %s455_s17, 1 }
   0x8   : > { %s728_s21 = scalar_select %p89_p1, %s660_s14, %s91_s19  }
   0x9   : > { %p730_p5 = por %p102_p2, %p101_p0  ;;  %p734_p6 = por %p108_p4, %p107_p3 }
   0xa   : > { %p458_p7 = scmp.ge.s32.totalorder %s664_s15, 1  ;;  %p140_p8 = scmp.lt.s32.totalorder %s664_s15, 3 }
   0xc   : > { %p141_p9 = pnand %p458_p7, %p140_p8 }
   0xd   : > { %v191_v0 = vld [vmem:[%s879_s1] sm:$0xff] (!%p141_p9)  ;;  %v192_v1 = vld [vmem:[%s879_s1 + $0x8] sm:$0xff] (!%p141_p9)  ;;  %v193_v2 = vld [vmem:[%s879_s1 + $0x10] sm:$0xff] (!%p141_p9)  ;;  %v666_v3 = vmov (!%p141_p9), 0.0|0.0   ;;  %vm667_vm0 = vmmov (!%p141_p9), 0   ;;  %v668_v6 = vmov (!%p141_p9), 0.0   ;;  %v359_v57 = vlaneseq (!%p141_p9) }
   0xe   : > { %144 = sbr.rel (%p141_p9) target bundleno = 528 (0x210), region = 32  ;;  %530 = vmatprep.subr.bf16.mxu0 (!%p141_p9), %v666_v3  ;;  %v531_v4 = vpack.c.bf16 (!%p141_p9), %v192_v1, %v191_v0  ;;  %v194_v5 = vld [vmem:[%s879_s1 + $0x18] sm:$0xff] (!%p141_p9)  ;;  %522 = vmatprep.mubr.msk.f32.mxu0 (!%p141_p9), %vm667_vm0, %v668_v6  ;;  %p164_p10 = scmp.lt.s32.totalorder (!%p141_p9), %s713_s16, 1  ;;  %v195_v8 = vld [vmem:[%s879_s1 + $0x20] sm:$0xff] (!%p141_p9)  ;;  %v196_v9 = vld [vmem:[%s879_s1 + $0x28] sm:$0xff] (!%p141_p9)  ;;  %vm279_vm1 = vcmask (!%p141_p9), 64512  }
   0xf   : > { %525 = vmatprep.subr.mxu1 (!%p141_p9), %v668_v6  ;;  %527 = vmatprep.mubr.msk.f32.mxu1 (!%p141_p9), %vm667_vm0, %v668_v6  ;;  %v534_v7 = vpack.c.bf16 (!%p141_p9), %v194_v5, %v193_v2  ;;  %v537_v10 = vpack.c.bf16 (!%p141_p9), %v196_v9, %v195_v8  ;;  %v197_v14 = vld [vmem:[%s879_s1 + $0x30] sm:$0xff] (!%p141_p9)  ;;  %v198_v15 = vld [vmem:[%s879_s1 + $0x38] sm:$0xff] (!%p141_p9)  ;;  %v199_v21 = vld [vmem:[%s879_s1 + $0x40] sm:$0xff] (!%p141_p9)  ;;  %s161_s27 = sand.u32 (!%p141_p9), 1, %s656_s13   ;;  %v360_v58 = vshrl.u32 (!%p141_p9), %v359_v57, 7  ;;  %s470_s29 = sshll.u32 (!%p141_p9), %s713_s16, 10 }
  0x10   : > { %532 = vmatpush3.bf16.msra.mxu0 (!%p141_p9), %v531_v4  ;;  %v540_v19 = vpack.c.bf16 (!%p141_p9), %v198_v15, %v197_v14  ;;  %v200_v22 = vld [vmem:[%s879_s1 + $0x48] sm:$0xff] (!%p141_p9)  ;;  %v201_v28 = vld [vmem:[%s879_s1 + $0x50] sm:$0xff] (!%p141_p9)  ;;  %v202_v29 = vld [vmem:[%s879_s1 + $0x58] sm:$0xff] (!%p141_p9)  ;;  %s459_s28 = sshll.u32 (!%p141_p9), %s161_s27, 6  ;;  %s831_s7 = scalar_lea.hbm (!%p141_p9), %s881_s3, %s470_s29 }
  0x11   : > { %533 = vmatprep.subr.bf16.mxu0 (!%p141_p9), %v666_v3  ;;  %v543_v26 = vpack.c.bf16 (!%p141_p9), %v200_v22, %v199_v21  ;;  %v546_v33 = vpack.c.bf16 (!%p141_p9), %v202_v29, %v201_v28  ;;  %v203_v34 = vld [vmem:[%s879_s1 + $0x60] sm:$0xff] (!%p141_p9)  ;;  %v204_v35 = vld [vmem:[%s879_s1 + $0x68] sm:$0xff] (!%p141_p9)  ;;  %v205_v39 = vld [vmem:[%s879_s1 + $0x70] sm:$0xff] (!%p141_p9)  ;;  %v361_v59 = vsub.s32 (!%p141_p9), 0, %v360_v58  ;;  %s163_s30 = scalar_lea.vmem (!%p141_p9), [#allocation2], %s459_s28  ;;  %s669_s9 = smov (!%p141_p9), [#allocation2]  }
  0x12   : > { %v549_v38 = vpack.c.bf16 (!%p141_p9), %v204_v35, %v203_v34  ;;  %v206_v40 = vld [vmem:[%s879_s1 + $0x78] sm:$0xff] (!%p141_p9)  ;;  %v278_v48 = vld [vmem:[%s880_s2] sm:$0xff] (!%p141_p9)  ;;  %s393_s4 = sshll.u32 (!%p141_p9), %s163_s30, 4  ;;  %s833_s4 = int_to_ptr.vmem [resolvable:$true] %s393_s4 }
  0x13   : > { %v552_v43 = vpack.c.bf16 (!%p141_p9), %v206_v40, %v205_v39  ;;  %526 = vmatpush3.msra.mxu1 (!%p141_p9), %v278_v48  ;;  %s602_s8 = scalar_lea.vmem (!%p141_p9), %s833_s4, 1024 }
  0x14   : > { %535 = vmatpush3.bf16.msra.mxu0 (!%p141_p9), %v534_v7  ;;  %p603_p11 = scmp.ne.s32.totalorder (!%p141_p9), %s833_s4, %s602_s8 }
  0x15   : > { %s165_s5 = scalar_select %p164_p10, %s713_s16, 1  ;;  %536 = vmatprep.subr.bf16.mxu0 %v666_v3 }
  0x16   : > { %s837_s16 = scalar_lea.sflag [#allocation3], %s161_s27  ;;  %p604_p12 = pnand %p603_p11, %p730_p5 }
  0x17   : > { %s469_s10 = sshll.u32 %s165_s5, 6 }
  0x18   : > { %s168_s19 = scalar_lea.vmem %s878_s0, %s469_s10  ;;  %538 = vmatpush3.bf16.msra.mxu0 %v537_v10  ;;  %p605_p13 = pneg %p604_p12 }
  0x19   : > { %v765_v11 = vld [vmem:[%s168_s19] sm:$0xff]  ;;  %v767_v12 = vld [vmem:[%s168_s19 + $0x8] sm:$0xff]  ;;  %v769_v13 = vld [vmem:[%s168_s19 + $0x10] sm:$0xff]  ;;  %539 = vmatprep.subr.bf16.mxu0 %v666_v3  ;;  %s606_s10 = sshll.u32 %s669_s9, 4  ;;  %s607_s10 = int_to_ptr.vmem [resolvable:$false] %s606_s10 }
  0x1a   : > { %v177_v16 = vadd.f32 %v767_v12, %v765_v11  ;;  %v780_v17 = vld [vmem:[%s168_s19 + $0x18] sm:$0xff]  ;;  %v783_v20 = vld [vmem:[%s168_s19 + $0x20] sm:$0xff]  ;;  %v793_v24 = vld [vmem:[%s168_s19 + $0x28] sm:$0xff]  ;;  %s608_s11 = scalar_lea.vmem %s607_s10, 2048  ;;  %p609_p0 = scmp.lt.s32.totalorder %s833_s4, %s607_s10 }
  0x1b   : > { %v175_v27 = vld [vmem:[%s168_s19 + $0x30] sm:$0xff]  ;;  %v176_v31 = vld [vmem:[%s168_s19 + $0x38] sm:$0xff]  ;;  %p610_p1 = scmp.lt.s32.totalorder %s608_s11, %s602_s8 }
  0x1c   : > { %v178_v18 = vadd.f32 %v177_v16, %v769_v13  ;;  %541 = vmatpush3.bf16.msra.mxu0 %v540_v19 }
  0x1d   : > { %542 = vmatprep.subr.bf16.mxu0 %v666_v3  ;;  %p611_p2 = por %p610_p1, %p609_p0 }
  0x1e   : > { %v179_v23 = vadd.f32 %v178_v18, %v780_v17 }
  0x1f   : > { %p612_p3 = pnand %p611_p2, %p605_p13 }
  0x20   : > { %v180_v25 = vadd.f32 %v179_v23, %v783_v20  ;;  %544 = vmatpush3.bf16.msra.mxu0 %v543_v26 }
  0x21   : > { %545 = vmatprep.subr.bf16.mxu0 %v666_v3 }
  0x22   : > { %v181_v30 = vadd.f32 %v180_v25, %v793_v24 }
  0x24   : > { %v182_v32 = vadd.f32 %v181_v30, %v175_v27  ;;  %547 = vmatpush3.bf16.msra.mxu0 %v546_v33 }
  0x25   : > { %548 = vmatprep.subr.bf16.mxu0 %v666_v3 }
  0x26   : > { %v183_v36 = vadd.f32 %v182_v32, %v176_v31 }
  0x28   : > { %v184_v37 = vrot.slane %v183_v36, 4  ;;  %550 = vmatpush3.bf16.msra.mxu0 %v549_v38 }
  0x29   : > { %551 = vmatprep.subr.bf16.mxu0 %v666_v3 }
  0x2a   : > { %v185_v41 = vadd.f32 %v184_v37, %v183_v36 }
  0x2c   : > { %v186_v42 = vrot.slane %v185_v41, 2  ;;  %553 = vmatpush3.bf16.msra.mxu0 %v552_v43 }
  0x2e   : > { %v187_v44 = vadd.f32 %v186_v42, %v185_v41 }
  0x30   : > { %v188_v45 = vrot.slane %v187_v44, 1 }
  0x32   : > { %v189_v46 = vadd.f32 %v188_v45, %v187_v44 }
  0x34   : > { %v190_v47 = vmul.f32 0.015625, %v189_v46 }
  0x36   : > { %523 = vmatmul.mubr.f32.vlgmr.msra.gmra.mrb[0].mxu0 %v190_v47 }
 0x109   : > { %v273_v49 = vpop.f32.mrb[0].mxu0 }
 0x10a   : > { %v277_v50 = vmax.f32 %v273_v49, 0.0  ;;  %v524_v51 = vpop.f32.mrb[1].mxu0 }
 0x10c   : > { %528 = vmatmul.mubr.msk.f32.vlgmr.msra.gmra.mrb[0].mxu1 %vm279_vm1, %v277_v50 }
 0x1df   : > { %v349_v52 = vpop.f32.mrb[0].mxu1 }
 0x1e0   : > { %v463_v53 = vmul.f32 -1.442695, %v349_v52  ;;  %v529_v54 = vpop.f32.mrb[1].mxu1 }
 0x1e2   : > { %598 = vpow2.f32 %v463_v53 }
 0x1ec   : > { %v599_v55 = vpop.eup %598 }
 0x1ed   : > { %v356_v56 = vadd.f32 1.0, %v599_v55 }
 0x1ef   : > { %600 = vrcp.f32 %v356_v56 }
 0x1f9   : > { %v601_v60 = vpop.eup %600 }
 0x1fa   : > { %v362_v61 = vrot.slane %v601_v60, %v361_v59 }
 0x1fc   : > { %v363_v62 = vmul.f32 %v362_v61, %v765_v11  ;;  %v364_v63 = vmul.f32 %v362_v61, %v767_v12  ;;  %v365_v0 = vmul.f32 %v362_v61, %v769_v13  ;;  %v366_v1 = vmul.f32 %v362_v61, %v780_v17 }
 0x1fd   : > { %v367_v2 = vmul.f32 %v362_v61, %v783_v20  ;;  %v368_v3 = vmul.f32 %v362_v61, %v793_v24  ;;  %v369_v4 = vmul.f32 %v362_v61, %v175_v27  ;;  %v370_v5 = vmul.f32 %v362_v61, %v176_v31 }
 0x1fe   : > { %371 = vst [vmem:[%s163_s30] sm:$0xff] %v363_v62  ;;  %372 = vst [vmem:[%s163_s30 + $0x8] sm:$0xff] %v364_v63 }
 0x1ff   : > { %373 = vst [vmem:[%s163_s30 + $0x10] sm:$0xff] %v365_v0  ;;  %374 = vst [vmem:[%s163_s30 + $0x18] sm:$0xff] %v366_v1 }
 0x200   : > { %375 = vst [vmem:[%s163_s30 + $0x20] sm:$0xff] %v367_v2  ;;  %376 = vst [vmem:[%s163_s30 + $0x28] sm:$0xff] %v368_v3 }
 0x201   : > { %377 = vst [vmem:[%s163_s30 + $0x30] sm:$0xff] %v369_v4  ;;  %378 = vst [vmem:[%s163_s30 + $0x38] sm:$0xff] %v370_v5 }
 0x202   : > { %615 = shalt.err (!%p612_p3)
}
 0x203   : > { %s616_s17 = scalar_lea.hbm %s831_s7, 1024  ;;  %s620_s24 = scalar_lea.hbm %s881_s3, 2048 }
 0x204   : > { %p617_p4 = scmp.ne.s32.totalorder %s831_s7, %s616_s17  ;;  %p621_p9 = scmp.lt.u32.totalorder %s831_s7, %s881_s3 }
 0x205   : > { %p622_p10 = scmp.lt.u32.totalorder %s620_s24, %s616_s17  ;;  %p624_p12 = scmp.lt.u32.totalorder %s616_s17, %s831_s7 }
 0x206   : > { %p618_p7 = pnand %p617_p4, %p730_p5 }
 0x207   : > { %p623_p11 = por %p622_p10, %p621_p9 }
 0x208   : > { %p619_p8 = pneg %p618_p7 }
 0x209   : > { %p625_p13 = por %p624_p12, %p623_p11 }
 0x20b   : > { %p626_p0 = pnand %p625_p13, %p619_p8 }
 0x20d   : > { %629 = shalt.err (!%p626_p0)
}
 0x20e   : > { %s670_s27 = smov 128   ;;  %s671_s28 = smov 8  }
 0x20f   : > { %554 = dma.vmem_to_hbm [thread:$0]  (%p730_p5), %s833_s4, 1024, %s831_s7, %s837_s16, %s670_s27, %s670_s27, %s671_s28  }
 0x210 PF: > { %p560_p1 = scmp.ge.s32.totalorder %s664_s15, 2  ;;  %s408_s29 = sand.u32 1, %s652_s12  }
 0x211   : > { %s409_s30 = scalar_lea.sflag [#allocation3], %s408_s29 }
 0x212   : > { %p557_p2 = pnand %p560_p1, %p734_p6 }
 0x214   : > { %647 = dma.done.wait (!%p557_p2), %s409_s30, 1024  }
 0x215   : > { %649 = vsyncadd (!%p557_p2), %s409_s30, 4294966272  ;;  %p13_p3 = scmp.ge.s32.totalorder %s717_s18, 4   ;;  %s884_s12 = smov %s656_s13 }
 0x216   : > { %s885_s13 = smov %s660_s14  ;;  %s886_s14 = smov %s728_s21 }
 0x217   : > { %s887_s15 = smov %s717_s18  ;;  %15 = sbr.rel (!%p13_p3) target bundleno = 3 (0x3), region = 67 }
 0x21e   :  { %414 = vsyncpa [#allocation3], 1 }
 0x21f   :  { %416 = vsyncpa [#allocation3 + $0x1], 1 }

</bundles_post_ra>
